<compile_context>
chip_gen: v7x
topology: tpu7x:2x2x1
jax: 0.10.0
libtpu: 0.0.40
codegen_flags: <defaults>
</compile_context>

<pallas_src>
import jax
import jax.numpy as jnp
from jax import lax
from jax.experimental import pallas as pl
from jax.experimental.pallas import tpu as pltpu


def _round_up(n, m):
    return ((n + m - 1) // m) * m


def _cdiv(a, b):
    return (a + b - 1) // b


def mlp_critic_kernel(x_ref, w1_ref, b1_ref, w2_ref, b2_ref, w3_ref, b3_ref,
                      o_ref):
    # x_ref : (TB, IN)  bf16      w1_ref: (H, IN) bf16   b1_ref: (H, 1) f32
    # w2_ref: (H, H)    bf16      b2_ref: (H, 1)  f32
    # w3_ref: (H, 1)    f32       b3_ref: (1, 1)  f32
    # o_ref : (1, TB)   f32   (batch on the lane axis -> lane-dense stores)

    # fc1: (H, TB) = w1 (H, IN) . x (TB, IN)^T — flash-attention-style trans_b
    # contraction; Mosaic feeds the transposed RHS straight to the MXU, no XLU
    # transpose of the large x tile is emitted.
    h1 = lax.dot_general(
        w1_ref[...], x_ref[...],
        dimension_numbers=(((1,), (1,)), ((), ())),
        preferred_element_type=jnp.float32,
    )
    # Fused epilogue: bias + ReLU + bf16 cast, so h1 is materialized once, in
    # bf16, directly as the fc2 MXU operand.
    h1 = jnp.maximum(h1 + b1_ref[...], 0.0).astype(jnp.bfloat16)

    # fc2: (H, TB) = w2 (H, H) @ h1 (H, TB); bf16 MXU operands, f32 accumulate.
    h2 = jnp.dot(w2_ref[...], h1, preferred_element_type=jnp.float32) + b2_ref[...]
    h2 = jnp.maximum(h2, 0.0)

    # fc3 (H -> 1) on the VPU/XLU: broadcast multiply + sublane reduction
    # (an N=1 MXU matmul would waste a full MXU pass).
    y = jnp.sum(h2 * w3_ref[...], axis=0, keepdims=True) + b3_ref[...]
    o_ref[...] = jnp.tanh(y).astype(o_ref.dtype)


def mlp_critic_forward(x, params, *, tb=8192):
    """x: (B, input_dim) float32 -> (B, 1) float32."""
    w1, b1, w2, b2, w3, b3 = params
    B, in_dim = x.shape
    H = w1.shape[0]

    # HBM-side matmul operand in bf16 (halves x traffic, native MXU rate).
    x = x.astype(jnp.bfloat16)

    # ---- adaptive batch tile --------------------------------------------
    tb_cap = max(128, _round_up(tb, 128))
    n_steps = max(1, _cdiv(B, tb_cap))
    if B > 128:                       # batch is splittable across the 2 v7x TCs
        n_steps = max(n_steps, 2)
        if n_steps % 2:               # even step count -> balanced megacore split
            n_steps += 1
    TB = _round_up(_cdiv(B, n_steps), 128)

    # ---- VMEM budget from lane/sublane-padded physical sizes -------------
    def padded_bytes(a):
        r, c = a.shape
        sub = 8 * 4 // a.dtype.itemsize        # 8 for f32, 16 for bf16
        return _round_up(r, sub) * _round_up(c, 128) * a.dtype.itemsize

    weight_bytes = sum(padded_bytes(a) for a in (w1, b1, w2, b2, w3, b3))
    lane_in = _round_up(in_dim, 128)

    def budget(tile):
        return (2 * tile * lane_in * 2         # x tile, bf16, lane-padded, 2 bufs
                + 2 * 8 * tile * 4             # (1->8, TB) f32 output, 2 bufs
                + 2 * weight_bytes             # resident params (default 2 bufs)
                + tile * H * (4 + 2 + 4)       # fc1 f32 acc + h1 bf16 + h2 f32
                + (6 << 20))                   # Mosaic internal scratch headroom

    try:
        cap = int(pltpu.get_tpu_info().vmem_capacity_bytes * 0.85)
    except Exception:
        cap = 48 << 20                          # v7x-safe fallback (64 MiB chip)
    if cap <= 0:
        cap = 48 << 20

    while budget(TB) > cap and TB > 128:        # shrink tile rather than OOM VMEM
        TB = max(128, _round_up(TB // 2, 128))
    vmem_bytes = int(min(max(budget(TB), 32 << 20), cap))

    B_pad = _round_up(B, TB)
    if B_pad != B:
        x = jnp.pad(x, ((0, B_pad - B), (0, 0)))
    grid = (B_pad // TB,)

    def resident(a):  # weights/biases: constant index_map -> DMA'd once
        return pl.BlockSpec(a.shape, lambda i, _nd=a.ndim: (0,) * _nd)

    cost = pl.CostEstimate(
        flops=2 * B_pad * (in_dim * H + H * H + H),
        transcendentals=B_pad,
        bytes_accessed=B_pad * in_dim * 2 + B_pad * 4
        + sum(int(a.size) * a.dtype.itemsize for a in (w1, b1, w2, b2, w3, b3)),
    )

    out = pl.pallas_call(
        mlp_critic_kernel,
        out_shape=jax.ShapeDtypeStruct((1, B_pad), jnp.float32),
        grid=grid,
        in_specs=[
            pl.BlockSpec((TB, in_dim), lambda i: (i, 0)),
            resident(w1), resident(b1), resident(w2), resident(b2),
            resident(w3), resident(b3),
        ],
        out_specs=pl.BlockSpec((1, TB), lambda i: (0, i)),
        compiler_params=pltpu.CompilerParams(
            dimension_semantics=("parallel",),
            vmem_limit_bytes=vmem_bytes,
        ),
        cost_estimate=cost,
    )(x, w1, b1, w2, b2, w3, b3)

    return out[0, :B].reshape(B, 1)


def init_params(key, input_dim, hidden=64, out_dim=1):
    """torch.nn.Linear-style init (uniform +/- 1/sqrt(fan_in)), kernel layouts:
    w1/w2 as (out, in) bf16; biases as (out, 1) f32; w3 as (hidden, 1) f32."""
    ks = jax.random.split(key, 6)

    def linear(kw, kb, fan_in, fan_out):
        bound = float(fan_in) ** -0.5
        w = jax.random.uniform(kw, (fan_out, fan_in), jnp.float32,
                               minval=-bound, maxval=bound)
        b = jax.random.uniform(kb, (fan_out, 1), jnp.float32,
                               minval=-bound, maxval=bound)
        return w, b

    w1, b1 = linear(ks[0], ks[1], input_dim, hidden)
    w2, b2 = linear(ks[2], ks[3], hidden, hidden)
    w3, b3 = linear(ks[4], ks[5], hidden, out_dim)
    return (w1.astype(jnp.bfloat16), b1,
            w2.astype(jnp.bfloat16), b2,
            jnp.transpose(w3).astype(jnp.float32),   # (hidden, 1)
            b3.reshape(1, 1))


def reference_forward(x, params):
    """Pure-JAX reference mirroring the kernel's dtype chain."""
    w1, b1, w2, b2, w3, b3 = params
    xf = x.astype(jnp.bfloat16).astype(jnp.float32)
    h1 = jnp.maximum(xf @ w1.astype(jnp.float32).T + b1[:, 0], 0.0)
    h1 = h1.astype(jnp.bfloat16).astype(jnp.float32)
    h2 = jnp.maximum(h1 @ w2.astype(jnp.float32).T + b2[:, 0], 0.0)
    y = jnp.sum(h2 * w3[:, 0], axis=-1, keepdims=True) + b3[0, 0]
    return jnp.tanh(y)


if __name__ == "__main__":
    key = jax.random.PRNGKey(0)
    k_x, k_p = jax.random.split(key)

    batch, input_dim = 8, 32
    x = jax.random.normal(k_x, (batch, input_dim), jnp.float32)
    params = init_params(k_p, input_dim)

    y = mlp_critic_forward(x, params)
    y = jax.block_until_ready(y)

    y_ref = reference_forward(x, params)
    assert y.shape == (batch, 1)
    assert jnp.allclose(y, y_ref, atol=1e-3, rtol=1e-3), "mismatch vs reference"

    print("KERNEL_OK")
</pallas_src>

<mosaic_0001>
module attributes {stable_mosaic.version = 11 : i64} {
  func.func @mlp_critic_kernel(%arg0: i32, %arg1: memref<128x32xbf16, #tpu.memory_space<vmem>>, %arg2: memref<64x32xbf16, #tpu.memory_space<vmem>>, %arg3: memref<64x1xf32, #tpu.memory_space<vmem>>, %arg4: memref<64x64xbf16, #tpu.memory_space<vmem>>, %arg5: memref<64x1xf32, #tpu.memory_space<vmem>>, %arg6: memref<64x1xf32, #tpu.memory_space<vmem>>, %arg7: memref<1x1xf32, #tpu.memory_space<vmem>>, %arg8: memref<1x128xf32, #tpu.memory_space<vmem>>) attributes {dimension_semantics = [#tpu.dimension_semantics<parallel>], iteration_bounds = array<i64: 1>, scalar_prefetch = 0 : i64, scratch_operands = 0 : i64, tpu.core_type = #tpu.core_type<tc>, window_params = [{transform_indices = @transform_0, window_bounds = array<i64: 128, 32>}, {pipeline_mode = #tpu.pipeline_mode<synchronous>, transform_indices = @transform_1, window_bounds = array<i64: 64, 32>}, {pipeline_mode = #tpu.pipeline_mode<synchronous>, transform_indices = @transform_2, window_bounds = array<i64: 64, 1>}, {pipeline_mode = #tpu.pipeline_mode<synchronous>, transform_indices = @transform_3, window_bounds = array<i64: 64, 64>}, {pipeline_mode = #tpu.pipeline_mode<synchronous>, transform_indices = @transform_4, window_bounds = array<i64: 64, 1>}, {pipeline_mode = #tpu.pipeline_mode<synchronous>, transform_indices = @transform_5, window_bounds = array<i64: 64, 1>}, {pipeline_mode = #tpu.pipeline_mode<synchronous>, transform_indices = @transform_6, window_bounds = array<i64: 1, 1>}, {transform_indices = @transform_7, window_bounds = array<i64: 1, 128>}]} {
    %c0 = arith.constant 0 : index
    %c0_0 = arith.constant 0 : index
    %0 = vector.load %arg2[%c0, %c0_0] : memref<64x32xbf16, #tpu.memory_space<vmem>>, vector<64x32xbf16>
    %c0_1 = arith.constant 0 : index
    %c0_2 = arith.constant 0 : index
    %1 = vector.load %arg1[%c0_1, %c0_2] : memref<128x32xbf16, #tpu.memory_space<vmem>>, vector<128x32xbf16>
    %cst = arith.constant dense<0.000000e+00> : vector<64x128xf32>
    %2 = tpu.matmul %0, %1, %cst {dimension_numbers = #tpu.dot_dimension_numbers<[1], [1], [0], [0], [0, 0, 1, 0], [], []>} : vector<64x32xbf16>, vector<128x32xbf16>, vector<64x128xf32> -> vector<64x128xf32>
    %c0_3 = arith.constant 0 : index
    %c0_4 = arith.constant 0 : index
    %3 = vector.load %arg3[%c0_3, %c0_4] : memref<64x1xf32, #tpu.memory_space<vmem>>, vector<64x1xf32>
    %4 = vector.broadcast %3 : vector<64x1xf32> to vector<64x128xf32>
    %5 = arith.addf %2, %4 : vector<64x128xf32>
    %cst_5 = arith.constant 0.000000e+00 : f32
    %6 = vector.broadcast %cst_5 : f32 to vector<64x128xf32>
    %7 = arith.maximumf %5, %6 : vector<64x128xf32>
    %8 = arith.truncf %7 : vector<64x128xf32> to vector<64x128xbf16>
    %c0_6 = arith.constant 0 : index
    %c0_7 = arith.constant 0 : index
    %9 = vector.load %arg4[%c0_6, %c0_7] : memref<64x64xbf16, #tpu.memory_space<vmem>>, vector<64x64xbf16>
    %cst_8 = arith.constant dense<0.000000e+00> : vector<64x128xf32>
    %10 = tpu.matmul %9, %8, %cst_8 {dimension_numbers = #tpu.dot_dimension_numbers<[1], [0], [0], [1], [0, 0, 1, 1], [], []>} : vector<64x64xbf16>, vector<64x128xbf16>, vector<64x128xf32> -> vector<64x128xf32>
    %c0_9 = arith.constant 0 : index
    %c0_10 = arith.constant 0 : index
    %11 = vector.load %arg5[%c0_9, %c0_10] : memref<64x1xf32, #tpu.memory_space<vmem>>, vector<64x1xf32>
    %12 = vector.broadcast %11 : vector<64x1xf32> to vector<64x128xf32>
    %13 = arith.addf %10, %12 : vector<64x128xf32>
    %cst_11 = arith.constant 0.000000e+00 : f32
    %14 = vector.broadcast %cst_11 : f32 to vector<64x128xf32>
    %15 = arith.maximumf %13, %14 : vector<64x128xf32>
    %c0_12 = arith.constant 0 : index
    %c0_13 = arith.constant 0 : index
    %16 = vector.load %arg6[%c0_12, %c0_13] : memref<64x1xf32, #tpu.memory_space<vmem>>, vector<64x1xf32>
    %17 = vector.broadcast %16 : vector<64x1xf32> to vector<64x128xf32>
    %18 = arith.mulf %15, %17 : vector<64x128xf32>
    %cst_14 = arith.constant dense<0.000000e+00> : vector<128xf32>
    %19 = vector.multi_reduction <add>, %18, %cst_14 [0] : vector<64x128xf32> to vector<128xf32>
    %20 = vector.shape_cast %19 : vector<128xf32> to vector<1x128xf32>
    %c0_15 = arith.constant 0 : index
    %c0_16 = arith.constant 0 : index
    %21 = vector.load %arg7[%c0_15, %c0_16] : memref<1x1xf32, #tpu.memory_space<vmem>>, vector<1x1xf32>
    %22 = vector.broadcast %21 : vector<1x1xf32> to vector<1x128xf32>
    %23 = arith.addf %20, %22 : vector<1x128xf32>
    %24 = math.tanh %23 : vector<1x128xf32>
    %c0_17 = arith.constant 0 : index
    %c0_18 = arith.constant 0 : index
    %25 = vector.load %arg8[%c0_17, %c0_18] : memref<1x128xf32, #tpu.memory_space<vmem>>, vector<1x128xf32>
    tpu.vector_store %arg8[%c0_17, %c0_18], %24 {strides = array<i32>} : memref<1x128xf32, #tpu.memory_space<vmem>>, vector<1x128xf32>,
    return
  }
  func.func @transform_0(%arg0: i32) -> (i32, i32) {
    %c0_i32 = arith.constant 0 : i32
    %c0_i32_0 = arith.constant 0 : i32
    return %arg0, %c0_i32 : i32, i32
  }
  func.func @transform_1(%arg0: i32) -> (i32, i32) {
    %c0_i32 = arith.constant 0 : i32
    %c0_i32_0 = arith.constant 0 : i32
    %c0_i32_1 = arith.constant 0 : i32
    return %c0_i32, %c0_i32_0 : i32, i32
  }
  func.func @transform_2(%arg0: i32) -> (i32, i32) {
    %c0_i32 = arith.constant 0 : i32
    %c0_i32_0 = arith.constant 0 : i32
    %c0_i32_1 = arith.constant 0 : i32
    return %c0_i32, %c0_i32_0 : i32, i32
  }
  func.func @transform_3(%arg0: i32) -> (i32, i32) {
    %c0_i32 = arith.constant 0 : i32
    %c0_i32_0 = arith.constant 0 : i32
    %c0_i32_1 = arith.constant 0 : i32
    return %c0_i32, %c0_i32_0 : i32, i32
  }
  func.func @transform_4(%arg0: i32) -> (i32, i32) {
    %c0_i32 = arith.constant 0 : i32
    %c0_i32_0 = arith.constant 0 : i32
    %c0_i32_1 = arith.constant 0 : i32
    return %c0_i32, %c0_i32_0 : i32, i32
  }
  func.func @transform_5(%arg0: i32) -> (i32, i32) {
    %c0_i32 = arith.constant 0 : i32
    %c0_i32_0 = arith.constant 0 : i32
    %c0_i32_1 = arith.constant 0 : i32
    return %c0_i32, %c0_i32_0 : i32, i32
  }
  func.func @transform_6(%arg0: i32) -> (i32, i32) {
    %c0_i32 = arith.constant 0 : i32
    %c0_i32_0 = arith.constant 0 : i32
    %c0_i32_1 = arith.constant 0 : i32
    return %c0_i32, %c0_i32_0 : i32, i32
  }
  func.func @transform_7(%arg0: i32) -> (i32, i32) {
    %c0_i32 = arith.constant 0 : i32
    %c0_i32_0 = arith.constant 0 : i32
    return %c0_i32, %arg0 : i32, i32
  }
}

</mosaic_0001>

<bundles_post_ra>
// kernel: tpu_custom_call.1
= control target key start
LH: loop header
LB: loop body
LE: loop exit
PB: predicated region body
PF: predicated region fallthrough
CT: control target
= control target key end

     0   :  { %s873_s0 = inlined_call_operand.vmem [shape: bf16[128,32], index: 0, kind: input, shape index: {}]   ;;  %s874_s1 = inlined_call_operand.vmem [shape: bf16[64,32], index: 1, kind: input, shape index: {}]   ;;  %s875_s2 = inlined_call_operand.vmem [shape: f32[64,1], index: 2, kind: input, shape index: {}]   ;;  %s876_s3 = inlined_call_operand.vmem [shape: bf16[64,64], index: 3, kind: input, shape index: {}]   ;;  %s877_s4 = inlined_call_operand.vmem [shape: f32[64,1], index: 4, kind: input, shape index: {}]   ;;  %s878_s5 = inlined_call_operand.vmem [shape: f32[64,1], index: 5, kind: input, shape index: {}]   ;;  %s879_s6 = inlined_call_operand.<no memory space> [shape: f32[1,1], index: 6, kind: input, shape index: {}]   ;;  %s880_s7 = inlined_call_operand.hbm [shape: f32[1,128], index: 7, kind: output, shape index: {}]  }
   0x1   :  { %v12_v0 = vstv %s879_s6 }
   0x2   :  { %13 = vst [vmem:[#allocation2] sm:$0x1] %v12_v0 }
   0x3   :  { %v630_v1 = vld [vmem:[%s873_s0] sm:$0xff]   ;;  %vm162_vm0 = vcmask 261120   ;;  %v631_v2 = vld [vmem:[%s873_s0 + $0x8] sm:$0xff]   ;;  %v672_v4 = vmov 0   ;;  %v632_v5 = vld [vmem:[%s873_s0 + $0x10] sm:$0xff]  }
   0x4   :  { %618 = vmatprep.subr.msk.bf16.mxu0 %vm162_vm0, %v630_v1  ;;  %v176_v3 = vsel %vm162_vm0, %v630_v1, 0  ;;  %628 = vset.pattern.permute.xlu0 %v672_v4  ;;  %v179_v6 = vsel %vm162_vm0, %v631_v2, 0  ;;  %v638_v7 = vld [vmem:[%s874_s1] sm:$0xff]   ;;  %v56_v9 = vld [vmem:[%s875_s2 + $0x10] sm:$0xff]  ;;  %v55_v10 = vld [vmem:[%s875_s2 + $0x8] sm:$0xff]  ;;  %v182_v12 = vsel %vm162_vm0, %v632_v5, 0 }
   0x5   :  { %579 = vmatpush3.bf16.xpose.msra.mxu0 %v176_v3  ;;  %629 = vset.pattern.permute.xlu1 %v672_v4  ;;  %v54_v8 = vld [vmem:[%s875_s2] sm:$0xff]  ;;  %v57_v11 = vld [vmem:[%s875_s2 + $0x18] sm:$0xff]  ;;  %v59_v15 = vld [vmem:[%s875_s2 + $0x28] sm:$0xff] }
   0x6   :  { %619 = vmatprep.subr.msk.bf16.mxu0 %vm162_vm0, %v631_v2  ;;  %594 = vmatprep.mubr.msk.bf16.mxu0 %vm162_vm0, %v638_v7  ;;  %v633_v13 = vld [vmem:[%s873_s0 + $0x18] sm:$0xff]   ;;  %v58_v14 = vld [vmem:[%s875_s2 + $0x20] sm:$0xff]  ;;  %v60_v16 = vld [vmem:[%s875_s2 + $0x30] sm:$0xff] }
   0x7   :  { %64 = vperm.xlu0 %628, %v54_v8   ;;  %74 = vperm.xlu1 %629, %v56_v9   ;;  %v61_v17 = vld [vmem:[%s875_s2 + $0x38] sm:$0xff] }
   0xb   :  { %69 = vperm.xlu0 %628, %v55_v10   ;;  %79 = vperm.xlu1 %629, %v57_v11  }
   0xd   :  { %581 = vmatpush3.bf16.xpose.msra.mxu0 %v179_v6 }
   0xe   :  { %620 = vmatprep.subr.msk.bf16.mxu0 %vm162_vm0, %v632_v5 }
   0xf   :  { %84 = vperm.xlu0 %628, %v58_v14   ;;  %89 = vperm.xlu1 %629, %v59_v15  }
  0x15   :  { %583 = vmatpush3.bf16.xpose.msra.mxu0 %v182_v12 }
  0x16   :  { %621 = vmatprep.subr.msk.bf16.mxu0 %vm162_vm0, %v633_v13 }
  0x17   :  { %14 = vsyncpa [#allocation4], 0  ;;  %v185_v18 = vsel %vm162_vm0, %v633_v13, 0  ;;  %v634_v19 = vld [vmem:[%s873_s0 + $0x20] sm:$0xff]   ;;  %94 = vperm.xlu0 %628, %v60_v16   ;;  %99 = vperm.xlu1 %629, %v61_v17   ;;  %v285_v21 = vld [vmem:[%s877_s4 + $0x8] sm:$0xff]  ;;  %vm352_vm1 = vcmask 523264  }
  0x18   :  { %v284_v20 = vld [vmem:[%s877_s4] sm:$0xff]  ;;  %v286_v22 = vld [vmem:[%s877_s4 + $0x10] sm:$0xff]  ;;  %v287_v23 = vld [vmem:[%s877_s4 + $0x18] sm:$0xff]  ;;  %v188_v24 = vsel %vm162_vm0, %v634_v19, 0 }
  0x19   :  { %v635_v25 = vld [vmem:[%s873_s0 + $0x28] sm:$0xff]   ;;  %v438_v26 = vld [vmem:[%s878_s5] sm:$0xff]  ;;  %v440_v29 = vld [vmem:[%s878_s5 + $0x10] sm:$0xff] }
  0x1a   :  { %v439_v27 = vld [vmem:[%s878_s5 + $0x8] sm:$0xff]  ;;  %v288_v28 = vld [vmem:[%s877_s4 + $0x20] sm:$0xff]  ;;  %v191_v30 = vsel %vm162_vm0, %v635_v25, 0  ;;  %v636_v31 = vld [vmem:[%s873_s0 + $0x30] sm:$0xff]  }
  0x1b   :  { %294 = vperm.xlu0 %628, %v284_v20   ;;  %299 = vperm.xlu1 %629, %v285_v21   ;;  %v289_v32 = vld [vmem:[%s877_s4 + $0x28] sm:$0xff]  ;;  %v441_v33 = vld [vmem:[%s878_s5 + $0x18] sm:$0xff]  ;;  %v290_v34 = vld [vmem:[%s877_s4 + $0x30] sm:$0xff]  ;;  %v194_v36 = vsel %vm162_vm0, %v636_v31, 0 }
  0x1c   :  { %v442_v35 = vld [vmem:[%s878_s5 + $0x20] sm:$0xff]  ;;  %v637_v37 = vld [vmem:[%s873_s0 + $0x38] sm:$0xff]   ;;  %v443_v39 = vld [vmem:[%s878_s5 + $0x28] sm:$0xff] }
  0x1d   :  { %585 = vmatpush3.bf16.xpose.msra.mxu0 %v185_v18  ;;  %v291_v38 = vld [vmem:[%s877_s4 + $0x38] sm:$0xff]  ;;  %v444_v40 = vld [vmem:[%s878_s5 + $0x30] sm:$0xff]  ;;  %v197_v42 = vsel %vm162_vm0, %v637_v37, 0  ;;  %v507_v43 = vld [vmem:[#allocation2] sm:$0x1] }
  0x1e   :  { %622 = vmatprep.subr.msk.bf16.mxu0 %vm162_vm0, %v634_v19  ;;  %v445_v41 = vld [vmem:[%s878_s5 + $0x38] sm:$0xff]  ;;  %v639_v44 = vld [vmem:[%s874_s1 + $0x8] sm:$0xff]   ;;  %v640_v45 = vld [vmem:[%s874_s1 + $0x10] sm:$0xff]  }
  0x1f   :  { %304 = vperm.xlu0 %628, %v286_v22   ;;  %309 = vperm.xlu1 %629, %v287_v23   ;;  %v641_v46 = vld [vmem:[%s874_s1 + $0x18] sm:$0xff]   ;;  %v642_v47 = vld [vmem:[%s876_s3] sm:$0xff]   ;;  %v643_v20 = vld [vmem:[%s876_s3 + $0x8] sm:$0xff]  }
  0x20   :  { %610 = vmatprep.mubr.msk.bf16.mxu1 %vm352_vm1, %v642_v47  ;;  %v644_v21 = vld [vmem:[%s876_s3 + $0x10] sm:$0xff]   ;;  %v645_v22 = vld [vmem:[%s876_s3 + $0x18] sm:$0xff]   ;;  %s673_s3 = smov [#allocation3]  }
  0x21   :  { %s526_s28 = sshll.u32 %s673_s3, 4  ;;  %s527_s28 = int_to_ptr.vmem [resolvable:$true] %s526_s28 }
  0x22   :  { %s648_s29 = scalar_lea.vmem %s527_s28, 16  ;;  %s652_s6 = scalar_lea.vmem %s527_s28, 32 }
  0x23   :  { %448 = vperm.xlu0 %628, %v438_v26   ;;  %453 = vperm.xlu1 %629, %v439_v27   ;;  %p649_p0 = scmp.ne.s32.totalorder %s527_s28, %s648_s29  ;;  %p653_p1 = scmp.lt.s32.totalorder %s527_s28, %s527_s28 }
  0x24   :  { %p654_p2 = scmp.lt.s32.totalorder %s652_s6, %s648_s29 }
  0x25   :  { %587 = vmatpush3.bf16.xpose.msra.mxu0 %v188_v24 }
  0x26   :  { %623 = vmatprep.subr.msk.bf16.mxu0 %vm162_vm0, %v635_v25  ;;  %p655_p3 = por %p654_p2, %p653_p1 }
  0x27   :  { %314 = vperm.xlu0 %628, %v288_v28   ;;  %458 = vperm.xlu1 %629, %v440_v29  }
  0x28   :  { %p656_p4 = pnand %p655_p3, %p649_p0 }
  0x2b   :  { %319 = vperm.xlu0 %628, %v289_v32   ;;  %463 = vperm.xlu1 %629, %v441_v33  }
  0x2d   :  { %589 = vmatpush3.bf16.xpose.msra.mxu0 %v191_v30 }
  0x2e   :  { %624 = vmatprep.subr.msk.bf16.mxu0 %vm162_vm0, %v636_v31 }
  0x2f   :  { %324 = vperm.xlu0 %628, %v290_v34   ;;  %468 = vperm.xlu1 %629, %v442_v35  }
  0x33   :  { %329 = vperm.xlu0 %628, %v291_v38   ;;  %473 = vperm.xlu1 %629, %v443_v39  }
  0x35   :  { %591 = vmatpush3.bf16.xpose.msra.mxu0 %v194_v36 }
  0x36   :  { %625 = vmatprep.subr.msk.bf16.mxu0 %vm162_vm0, %v637_v37 }
  0x37   :  { %478 = vperm.xlu0 %628, %v444_v40   ;;  %483 = vperm.xlu1 %629, %v445_v41  }
  0x3b   :  { %510 = vperm.xlu0 %628, %v507_v43  }
  0x3d   :  { %593 = vmatpush3.bf16.xpose.msra.mxu0 %v197_v42 }
  0x44   :  { %595 = vmatmul.mubr.msk.bf16.vlgmr.msra.gmra.mrb[0].mxu0 %vm162_vm0, %v639_v44 }
  0x45   :  { %598 = vmatprep.mubr.msk.bf16.mxu0 %vm162_vm0, %v640_v45 }
  0x4c   :  { %599 = vmatmul.mubr.msk.bf16.gmra.mrb[4].mxu0 %vm162_vm0, %v641_v46 }
  0x86   :  { %v65_v48 = vpop.permute.xlu0 %64  ;;  %v75_v49 = vpop.permute.xlu1 %74 }
  0x8a   :  { %v70_v50 = vpop.permute.xlu0 %69  ;;  %v80_v51 = vpop.permute.xlu1 %79 }
  0x8e   :  { %v85_v55 = vpop.permute.xlu0 %84  ;;  %v90_v60 = vpop.permute.xlu1 %89 }
  0x96   :  { %v95_v3 = vpop.permute.xlu0 %94  ;;  %v100_v8 = vpop.permute.xlu1 %99 }
  0x9a   :  { %v295_v23 = vpop.permute.xlu0 %294  ;;  %v300_v24 = vpop.permute.xlu1 %299 }
  0x9e   :  { %v305_v25 = vpop.permute.xlu0 %304  ;;  %v310_v26 = vpop.permute.xlu1 %309 }
  0xa2   :  { %v449_v27 = vpop.permute.xlu0 %448  ;;  %v454_v28 = vpop.permute.xlu1 %453 }
  0xa6   :  { %v315_v29 = vpop.permute.xlu0 %314  ;;  %v459_v30 = vpop.permute.xlu1 %458 }
  0xaa   :  { %v320_v31 = vpop.permute.xlu0 %319  ;;  %v464_v33 = vpop.permute.xlu1 %463 }
  0xae   :  { %v325_v42 = vpop.permute.xlu0 %324  ;;  %v469_v45 = vpop.permute.xlu1 %468 }
 0x117   :  { %v596_v52 = vpop.f32.mrb[0].mxu0 }
 0x118   :  { %v242_v53 = vadd.f32 %v596_v52, %v75_v49  ;;  %v233_v54 = vpop.f32.mrb[1].mxu0 }
 0x119   :  { %v234_v56 = vadd.f32 %v233_v54, %v65_v48  ;;  %v597_v57 = vpop.f32.mrb[2].mxu0 }
 0x11a   :  { %v245_v58 = vadd.f32 %v597_v57, %v80_v51  ;;  %v236_v59 = vpop.f32.mrb[3].mxu0  ;;  %v266_v62 = vmax.f32 %v242_v53, 0.0 }
 0x11b   :  { %v237_v61 = vadd.f32 %v236_v59, %v70_v50  ;;  %v264_v0 = vmax.f32 %v234_v56, 0.0  ;;  %v330_v56 = vpop.permute.xlu0 %329 }
 0x11c   :  { %v267_v63 = vmax.f32 %v245_v58, 0.0 }
 0x11d   :  { %v265_v1 = vmax.f32 %v237_v61, 0.0 }
 0x11e   :  { %v273_v2 = vpack.c.bf16 %v267_v63, %v266_v62  ;;  %v474_v63 = vpop.permute.xlu1 %473 }
 0x11f   :  { %v600_v4 = vpop.f32.mrb[4].mxu0  ;;  %v272_v5 = vpack.c.bf16 %v265_v1, %v264_v0 }
 0x120   :  { %v258_v6 = vadd.f32 %v600_v4, %v95_v3  ;;  %v249_v7 = vpop.f32.mrb[5].mxu0 }
 0x121   :  { %v250_v9 = vadd.f32 %v249_v7, %v85_v55  ;;  %v601_v10 = vpop.f32.mrb[6].mxu0  ;;  %602 = vmatprep.subr.bf16.mxu1 %v272_v5  ;;  %v479_v7 = vpop.permute.xlu0 %478 }
 0x122   :  { %v261_v11 = vadd.f32 %v601_v10, %v100_v8  ;;  %v252_v12 = vpop.f32.mrb[7].mxu0  ;;  %603 = vmatpush3.bf16.msra.mxu1 %v272_v5  ;;  %v270_v14 = vmax.f32 %v258_v6, 0.0  ;;  %v484_v10 = vpop.permute.xlu1 %483 }
 0x123   :  { %v253_v13 = vadd.f32 %v252_v12, %v90_v60  ;;  %604 = vmatprep.subr.bf16.mxu1 %v273_v2  ;;  %v268_v16 = vmax.f32 %v250_v9, 0.0 }
 0x124   :  { %v271_v15 = vmax.f32 %v261_v11, 0.0 }
 0x125   :  { %v269_v17 = vmax.f32 %v253_v13, 0.0  ;;  %v513_v13 = vlaneseq }
 0x126   :  { %v275_v18 = vpack.c.bf16 %v271_v15, %v270_v14  ;;  %605 = vmatpush3.bf16.msra.mxu1 %v273_v2 }
 0x127   :  { %v274_v19 = vpack.c.bf16 %v269_v17, %v268_v16  ;;  %v514_v16 = vshrl.u32 %v513_v13, 7 }
 0x129   :  { %606 = vmatprep.subr.bf16.mxu1 %v274_v19 }
 0x12a   :  { %607 = vmatpush3.bf16.msra.mxu1 %v274_v19  ;;  %v515_v19 = vsub.s32 0, %v514_v16 }
 0x12b   :  { %608 = vmatprep.subr.bf16.mxu1 %v275_v18 }
 0x12e   :  { %609 = vmatpush3.bf16.msra.mxu1 %v275_v18 }
 0x131   :  { %611 = vmatmul.mubr.msk.bf16.vlgmr.msra.gmra.mrb[0].mxu1 %vm352_vm1, %v643_v20 }
 0x132   :  { %614 = vmatprep.mubr.msk.bf16.mxu1 %vm352_vm1, %v644_v21  ;;  %v511_v21 = vpop.permute.xlu0 %510 }
 0x139   :  { %615 = vmatmul.mubr.msk.bf16.gmra.mrb[4].mxu1 %vm352_vm1, %v645_v22 }
 0x204   :  { %v612_v32 = vpop.f32.mrb[0].mxu1 }
 0x205   :  { %v399_v34 = vpop.f32.mrb[1].mxu1  ;;  %v408_v35 = vadd.f32 %v612_v32, %v305_v25 }
 0x206   :  { %v400_v36 = vadd.f32 %v399_v34, %v295_v23  ;;  %v613_v37 = vpop.f32.mrb[2].mxu1  ;;  %v516_v23 = vrot.slane %v511_v21, %v515_v19 }
 0x207   :  { %v411_v38 = vadd.f32 %v613_v37, %v310_v26  ;;  %v402_v39 = vpop.f32.mrb[3].mxu1  ;;  %v432_v43 = vmax.f32 %v408_v35, 0.0 }
 0x208   :  { %v430_v40 = vmax.f32 %v400_v36, 0.0  ;;  %v403_v41 = vadd.f32 %v402_v39, %v300_v24 }
 0x209   :  { %v433_v46 = vmax.f32 %v411_v38, 0.0  ;;  %v488_v51 = vmul.f32 %v459_v30, %v432_v43 }
 0x20a   :  { %v431_v44 = vmax.f32 %v403_v41, 0.0  ;;  %v486_v47 = vmul.f32 %v449_v27, %v430_v40 }
 0x20b   :  { %v489_v57 = vmul.f32 %v464_v33, %v433_v46 }
 0x20c   :  { %v487_v48 = vmul.f32 %v454_v28, %v431_v44  ;;  %v616_v49 = vpop.f32.mrb[4].mxu1 }
 0x20d   :  { %v415_v50 = vpop.f32.mrb[5].mxu1  ;;  %v424_v53 = vadd.f32 %v616_v49, %v325_v42 }
 0x20e   :  { %v494_v52 = vadd.f32 %v487_v48, %v486_v47  ;;  %v416_v54 = vadd.f32 %v415_v50, %v315_v29  ;;  %v617_v55 = vpop.f32.mrb[6].mxu1 }
 0x20f   :  { %v418_v58 = vpop.f32.mrb[7].mxu1  ;;  %v427_v61 = vadd.f32 %v617_v55, %v330_v56  ;;  %v436_v0 = vmax.f32 %v424_v53, 0.0 }
 0x210   :  { %v495_v59 = vadd.f32 %v494_v52, %v488_v51  ;;  %v434_v60 = vmax.f32 %v416_v54, 0.0  ;;  %v419_v62 = vadd.f32 %v418_v58, %v320_v31 }
 0x211   :  { %v437_v5 = vmax.f32 %v427_v61, 0.0  ;;  %v492_v8 = vmul.f32 %v479_v7, %v436_v0 }
 0x212   :  { %v490_v1 = vmul.f32 %v469_v45, %v434_v60  ;;  %v496_v2 = vadd.f32 %v495_v59, %v489_v57  ;;  %v435_v3 = vmax.f32 %v419_v62, 0.0 }
 0x213   :  { %v493_v11 = vmul.f32 %v484_v10, %v437_v5 }
 0x214   :  { %v497_v4 = vadd.f32 %v496_v2, %v490_v1  ;;  %v491_v6 = vmul.f32 %v474_v63, %v435_v3 }
 0x216   :  { %v498_v9 = vadd.f32 %v497_v4, %v491_v6 }
 0x218   :  { %v499_v12 = vadd.f32 %v498_v9, %v492_v8 }
 0x21a   :  { %v500_v14 = vadd.f32 %v499_v12, %v493_v11 }
 0x21c   :  { %v501_v15 = vrot.slane %v500_v14, 4 }
 0x21e   :  { %v502_v17 = vadd.f32 %v501_v15, %v500_v14 }
 0x220   :  { %v503_v18 = vrot.slane %v502_v17, 2 }
 0x222   :  { %v504_v20 = vadd.f32 %v503_v18, %v502_v17 }
 0x224   :  { %v505_v22 = vrot.slane %v504_v20, 1 }
 0x226   :  { %v506_v24 = vadd.f32 %v505_v22, %v504_v20 }
 0x228   :  { %v517_v25 = vadd.f32 %v516_v23, %v506_v24 }
 0x22a   :  { %646 = vtanh.f32 %v517_v25 }
 0x234   :  { %v647_v26 = vpop.eup %646 }
 0x235   :  { %519 = vst [vmem:[#allocation3] sm:$0x1] %v647_v26 }
 0x236   :  { %659 = shalt.err (!%p656_p4)
}
 0x237   :  { %s660_s9 = scalar_lea.hbm %s880_s7, 16 }
 0x238   :  { %p661_p5 = scmp.ne.s32.totalorder %s880_s7, %s660_s9  ;;  %p664_p6 = scmp.lt.u32.totalorder %s660_s9, %s880_s7 }
 0x23a   :  { %p666_p7 = pnand %p664_p6, %p661_p5 }
 0x23c   :  { %669 = shalt.err (!%p666_p7)
}
 0x23d   :  { %529 = dma.vmem_to_hbm [thread:$0]  %s527_s28, 16, %s880_s7, [#allocation4]  }
 0x23e   :  { %670 = dma.done.wait [#allocation4], 16  }
 0x23f   :  { %671 = vsyncadd [#allocation4], 4294967280 }
 0x240   :  { %533 = vsyncpa [#allocation4], 1 }

</bundles_post_ra>
